<compile_context>
chip_gen: v7x
topology: tpu7x:2x2x1
jax: 0.10.0
libtpu: 0.0.40
codegen_flags: <defaults>
</compile_context>

<pallas_src>
import jax
import jax.numpy as jnp
from jax.experimental import pallas as pl
from jax.experimental.pallas import tpu as pltpu


def _round_up(x, m):
    return ((x + m - 1) // m) * m


def _fusion_kernel_packed(t_ref, g_ref, w_ref, m_ref, b_ref, out_ref):
    # t_ref/g_ref/out_ref: (TM, 128) row tiles (R = 128//D positions per row)
    # w_ref: (2, 128)  row 0 = w_text tiled R times, row 1 = w_graph tiled
    # m_ref: (128, 128) block-diagonal ones (blocks of size D)
    # b_ref: (1, 1) SMEM scalar bias
    tf = t_ref[...].astype(jnp.float32)
    gf = g_ref[...].astype(jnp.float32)
    wt = w_ref[0:1, :].astype(jnp.float32)
    wg = w_ref[1:2, :].astype(jnp.float32)
    z = tf * wt + gf * wg                                       # (TM, 128)
    # Segmented lane-sum on the MXU: lane l of logits = sum of z over the
    # D-lane group containing l -> per-position logit replicated per lane.
    logits = jnp.dot(z, m_ref[...],
                     preferred_element_type=jnp.float32) + b_ref[0, 0]
    gate = jax.nn.sigmoid(logits)                               # (TM, 128)
    out_ref[...] = (gf + gate * (tf - gf)).astype(out_ref.dtype)


def _fusion_kernel_wide(t_ref, g_ref, w_ref, b_ref, out_ref):
    # Plain path (D >= 128 or D does not divide 128): one position per row.
    tf = t_ref[...].astype(jnp.float32)
    gf = g_ref[...].astype(jnp.float32)
    wt = w_ref[0:1, :].astype(jnp.float32)
    wg = w_ref[1:2, :].astype(jnp.float32)
    z = tf * wt + gf * wg                                       # (TM, D)
    logits = jnp.sum(z, axis=-1, keepdims=True) + b_ref[0, 0]   # (TM, 1)
    gate = jax.nn.sigmoid(logits)
    out_ref[...] = (gf + gate * (tf - gf)).astype(out_ref.dtype)


def weight_fusion_pallas(features_text, features_graph, fc_weight, fc_bias):
    """JAX/Pallas equivalent of Weight_Fusion.forward.

    features_text : (B, S_t, D)
    features_graph: (B, S_g, D)
    fc_weight     : (1, 2*D)   (PyTorch nn.Linear weight layout)
    fc_bias       : (1,)
    Returns (fused_embedding (B, S, D), combined_attention_mask (B, S)).
    """
    B, St, D = features_text.shape
    Bg, Sg, Dg = features_graph.shape
    assert B == Bg and D == Dg
    S = max(St, Sg)
    dtype = features_text.dtype

    # --- attention masks (pure glue, matches the torch code) ---
    mask_text = jnp.ones((B, St), dtype=jnp.float32)
    mask_graph = jnp.ones((B, Sg), dtype=jnp.float32)
    if St < S:
        mask_text = jnp.pad(mask_text, ((0, 0), (0, S - St)))
    if Sg < S:
        mask_graph = jnp.pad(mask_graph, ((0, 0), (0, S - Sg)))
    combined_mask = mask_text * mask_graph

    # --- lane packing factor ---
    if D < 128 and 128 % D == 0:
        R = 128 // D
    else:
        R = 1
    L = R * D

    # Pad sequence axes to S_r (>= S, multiple of R).  Only the shorter tensor
    # actually gets zero rows (the module semantics require them); when
    # St == Sg and S % R == 0 this is copy-free.
    S_r = _round_up(S, R)
    ft = features_text
    fg = features_graph
    if St < S_r:
        ft = jnp.pad(ft, ((0, 0), (0, S_r - St), (0, 0)))
    if Sg < S_r:
        fg = jnp.pad(fg, ((0, 0), (0, S_r - Sg), (0, 0)))

    rows_per_b = S_r // R
    N = B * rows_per_b
    ft2 = ft.reshape(N, L)          # contiguous reshape, no data movement
    fg2 = fg.reshape(N, L)

    # --- row tile: as big as possible under ~2 MiB per stream buffer ---
    tm_budget = max(8, ((2 * 1024 * 1024) // (L * 4)) // 8 * 8)
    TM = max(8, min(1024, tm_budget, _round_up(N, 8)))
    N_pad = _round_up(N, TM)
    if N_pad > N:
        ft2 = jnp.pad(ft2, ((0, N_pad - N), (0, 0)))
        fg2 = jnp.pad(fg2, ((0, N_pad - N), (0, 0)))

    # --- parameters: split the (1, 2D) linear, tile to packed layout, fuse ---
    w_text = jnp.tile(fc_weight[0, :D].astype(jnp.float32), R)
    w_graph = jnp.tile(fc_weight[0, D:].astype(jnp.float32), R)
    w_tg = jnp.stack([w_text, w_graph], axis=0)          # (2, L)
    bias = fc_bias.reshape(1, 1).astype(jnp.float32)     # SMEM scalar

    grid = (N_pad // TM,)
    row_spec = pl.BlockSpec((TM, L), lambda i: (i, 0))

    in_specs = [row_spec, row_spec,
                pl.BlockSpec((2, L), lambda i: (0, 0))]  # fused weight halves
    operands = [ft2, fg2, w_tg]

    if R > 1:
        lane = jnp.arange(L)
        seg = lane // D
        m_blockdiag = (seg[:, None] == seg[None, :]).astype(jnp.float32)  # (128,128)
        in_specs.append(pl.BlockSpec((L, L), lambda i: (0, 0)))
        operands.append(m_blockdiag)
        kernel = _fusion_kernel_packed
    else:
        kernel = _fusion_kernel_wide

    in_specs.append(pl.BlockSpec(memory_space=pltpu.MemorySpace.SMEM))    # bias
    operands.append(bias)

    grid_spec = pltpu.PrefetchScalarGridSpec(
        num_scalar_prefetch=0,
        grid=grid,
        in_specs=in_specs,
        out_specs=row_spec,
    )

    fused2 = pl.pallas_call(
        kernel,
        out_shape=jax.ShapeDtypeStruct((N_pad, L), dtype),
        grid_spec=grid_spec,
        compiler_params=pltpu.CompilerParams(
            dimension_semantics=("parallel",),
            vmem_limit_bytes=32 * 1024 * 1024,
        ),
    )(*operands)

    fused = fused2[:N].reshape(B, S_r, D)[:, :S, :]
    return fused, combined_mask


def _reference(features_text, features_graph, fc_weight, fc_bias):
    """Pure-JAX reference mirroring the PyTorch forward, for verification."""
    B, St, D = features_text.shape
    _, Sg, _ = features_graph.shape
    S = max(St, Sg)
    mt = jnp.ones((B, St), dtype=jnp.float32)
    mg = jnp.ones((B, Sg), dtype=jnp.float32)
    if St < S:
        features_text = jnp.pad(features_text, ((0, 0), (0, S - St), (0, 0)))
        mt = jnp.pad(mt, ((0, 0), (0, S - St)))
    if Sg < S:
        features_graph = jnp.pad(features_graph, ((0, 0), (0, S - Sg), (0, 0)))
        mg = jnp.pad(mg, ((0, 0), (0, S - Sg)))
    combined = jnp.concatenate([features_text, features_graph], axis=-1)
    logits = combined @ fc_weight.T + fc_bias
    w = jax.nn.sigmoid(logits)
    fused = w * features_text + (1.0 - w) * features_graph
    return fused, mt * mg


if __name__ == "__main__":
    key = jax.random.PRNGKey(0)
    B, St, Sg, D = 2, 8, 6, 32   # input_size = D = 32

    k1, k2, k3, k4 = jax.random.split(key, 4)
    features_text = jax.random.normal(k1, (B, St, D), dtype=jnp.float32)
    features_graph = jax.random.normal(k2, (B, Sg, D), dtype=jnp.float32)

    # Deterministic nn.Linear(2*D, 1) init (uniform(-1/sqrt(fan_in), +...)).
    bound = 1.0 / (2.0 * D) ** 0.5
    fc_weight = jax.random.uniform(k3, (1, 2 * D), minval=-bound, maxval=bound)
    fc_bias = jax.random.uniform(k4, (1,), minval=-bound, maxval=bound)

    fused, mask = weight_fusion_pallas(features_text, features_graph,
                                       fc_weight, fc_bias)
    jax.block_until_ready(fused)
    jax.block_until_ready(mask)

    fused_ref, mask_ref = _reference(features_text, features_graph,
                                     fc_weight, fc_bias)
    assert fused.shape == (B, max(St, Sg), D)
    assert mask.shape == (B, max(St, Sg))
    assert jnp.allclose(fused, fused_ref, atol=1e-5, rtol=1e-5)
    assert jnp.allclose(mask, mask_ref)
    print("KERNEL_OK")
</pallas_src>

<mosaic_0001>
module attributes {stable_mosaic.version = 11 : i64} {
  func.func @_fusion_kernel_packed(%arg0: i32, %arg1: memref<8x128xf32, #tpu.memory_space<vmem>>, %arg2: memref<8x128xf32, #tpu.memory_space<vmem>>, %arg3: memref<2x128xf32, #tpu.memory_space<vmem>>, %arg4: memref<128x128xf32, #tpu.memory_space<vmem>>, %arg5: memref<1x1xf32, #tpu.memory_space<smem>>, %arg6: memref<8x128xf32, #tpu.memory_space<vmem>>) attributes {dimension_semantics = [#tpu.dimension_semantics<parallel>], iteration_bounds = array<i64: 1>, scalar_prefetch = 0 : i64, scratch_operands = 0 : i64, tpu.core_type = #tpu.core_type<tc>, window_params = [{transform_indices = @transform_0, window_bounds = array<i64: 8, 128>}, {transform_indices = @transform_1, window_bounds = array<i64: 8, 128>}, {pipeline_mode = #tpu.pipeline_mode<synchronous>, transform_indices = @transform_2, window_bounds = array<i64: 2, 128>}, {pipeline_mode = #tpu.pipeline_mode<synchronous>, transform_indices = @transform_3, window_bounds = array<i64: 128, 128>}, {transform_indices = @transform_4, window_bounds = array<i64: 1, 1>}, {transform_indices = @transform_5, window_bounds = array<i64: 8, 128>}]} {
    %c0 = arith.constant 0 : index
    %c0_0 = arith.constant 0 : index
    %0 = vector.load %arg1[%c0, %c0_0] : memref<8x128xf32, #tpu.memory_space<vmem>>, vector<8x128xf32>
    %c0_1 = arith.constant 0 : index
    %c0_2 = arith.constant 0 : index
    %1 = vector.load %arg2[%c0_1, %c0_2] : memref<8x128xf32, #tpu.memory_space<vmem>>, vector<8x128xf32>
    %c0_3 = arith.constant 0 : index
    %c0_4 = arith.constant 0 : index
    %2 = vector.load %arg3[%c0_3, %c0_4] : memref<2x128xf32, #tpu.memory_space<vmem>>, vector<1x128xf32>
    %c1 = arith.constant 1 : index
    %c0_5 = arith.constant 0 : index
    %3 = vector.load %arg3[%c1, %c0_5] : memref<2x128xf32, #tpu.memory_space<vmem>>, vector<1x128xf32>
    %4 = vector.broadcast %2 : vector<1x128xf32> to vector<8x128xf32>
    %5 = arith.mulf %0, %4 : vector<8x128xf32>
    %6 = vector.broadcast %3 : vector<1x128xf32> to vector<8x128xf32>
    %7 = arith.mulf %1, %6 : vector<8x128xf32>
    %8 = arith.addf %5, %7 : vector<8x128xf32>
    %c0_6 = arith.constant 0 : index
    %c0_7 = arith.constant 0 : index
    %9 = vector.load %arg4[%c0_6, %c0_7] : memref<128x128xf32, #tpu.memory_space<vmem>>, vector<128x128xf32>
    %cst = arith.constant dense<0.000000e+00> : vector<8x128xf32>
    %10 = tpu.matmul %8, %9, %cst {dimension_numbers = #tpu.dot_dimension_numbers<[1], [0], [0], [1], [0, 0, 1, 1], [], []>} : vector<8x128xf32>, vector<128x128xf32>, vector<8x128xf32> -> vector<8x128xf32>
    %c0_8 = arith.constant 0 : index
    %c0_9 = arith.constant 0 : index
    %11 = memref.load %arg5[%c0_8, %c0_9] : memref<1x1xf32, #tpu.memory_space<smem>>
    %12 = vector.broadcast %11 : f32 to vector<8x128xf32>
    %13 = arith.addf %10, %12 : vector<8x128xf32>
    %14 = arith.negf %13 : vector<8x128xf32>
    %15 = math.exp %14 : vector<8x128xf32>
    %cst_10 = arith.constant 1.000000e+00 : f32
    %16 = vector.broadcast %cst_10 : f32 to vector<8x128xf32>
    %17 = arith.addf %16, %15 : vector<8x128xf32>
    %18 = arith.divf %16, %17 : vector<8x128xf32>
    %19 = arith.subf %0, %1 : vector<8x128xf32>
    %20 = arith.mulf %18, %19 : vector<8x128xf32>
    %21 = arith.addf %1, %20 : vector<8x128xf32>
    %c0_11 = arith.constant 0 : index
    %c0_12 = arith.constant 0 : index
    %22 = vector.load %arg6[%c0_11, %c0_12] : memref<8x128xf32, #tpu.memory_space<vmem>>, vector<8x128xf32>
    tpu.vector_store %arg6[%c0_11, %c0_12], %21 {strides = array<i32>} : memref<8x128xf32, #tpu.memory_space<vmem>>, vector<8x128xf32>,
    return
  }
  func.func @transform_0(%arg0: i32) -> (i32, i32) {
    %c0_i32 = arith.constant 0 : i32
    %c0_i32_0 = arith.constant 0 : i32
    return %arg0, %c0_i32 : i32, i32
  }
  func.func @transform_1(%arg0: i32) -> (i32, i32) {
    %c0_i32 = arith.constant 0 : i32
    %c0_i32_0 = arith.constant 0 : i32
    return %arg0, %c0_i32 : i32, i32
  }
  func.func @transform_2(%arg0: i32) -> (i32, i32) {
    %c0_i32 = arith.constant 0 : i32
    %c0_i32_0 = arith.constant 0 : i32
    %c0_i32_1 = arith.constant 0 : i32
    return %c0_i32, %c0_i32_0 : i32, i32
  }
  func.func @transform_3(%arg0: i32) -> (i32, i32) {
    %c0_i32 = arith.constant 0 : i32
    %c0_i32_0 = arith.constant 0 : i32
    %c0_i32_1 = arith.constant 0 : i32
    return %c0_i32, %c0_i32_0 : i32, i32
  }
  func.func @transform_4(%arg0: i32) -> (i32, i32) {
    %c0_i32 = arith.constant 0 : i32
    %c0_i32_0 = arith.constant 0 : i32
    %c0_i32_1 = arith.constant 0 : i32
    return %c0_i32, %c0_i32_0 : i32, i32
  }
  func.func @transform_5(%arg0: i32) -> (i32, i32) {
    %c0_i32 = arith.constant 0 : i32
    %c0_i32_0 = arith.constant 0 : i32
    return %arg0, %c0_i32 : i32, i32
  }
}

</mosaic_0001>

<bundles_post_ra>
// kernel: tpu_custom_call.1
= control target key start
LH: loop header
LB: loop body
LE: loop exit
PB: predicated region body
PF: predicated region fallthrough
CT: control target
= control target key end

     0   :  { %11 = vsyncpa [#allocation4], 0  ;;  %s470_s0 = inlined_call_operand.hbm [shape: f32[8,128], index: 0, kind: input, shape index: {}]   ;;  %s471_s1 = inlined_call_operand.hbm [shape: f32[8,128], index: 1, kind: input, shape index: {}]   ;;  %s472_s2 = inlined_call_operand.vmem [shape: f32[2,128], index: 2, kind: input, shape index: {}]   ;;  %s473_s3 = inlined_call_operand.hbm [shape: f32[128,128], index: 3, kind: input, shape index: {}]   ;;  %s474_s4 = inlined_call_operand.<no memory space> [shape: f32[1,1], index: 4, kind: input, shape index: {}]   ;;  %s475_s5 = inlined_call_operand.hbm [shape: f32[8,128], index: 5, kind: output, shape index: {}]  }
   0x1   :  { %12 = vsyncpa [#allocation7], 0 }
   0x2   :  { %13 = vsyncpa [#allocation5], 0  ;;  %s374_s18 = smov [#allocation6]   ;;  %s375_s20 = smov [#allocation3]  }
   0x3   :  { %s30_s19 = sshll.u32 %s374_s18, 4  ;;  %s20_s21 = sshll.u32 %s375_s20, 4  ;;  %s31_s19 = int_to_ptr.vmem [resolvable:$true] %s30_s19  ;;  %s21_s21 = int_to_ptr.vmem [resolvable:$true] %s20_s21 }
   0x4   :  { %s280_s24 = scalar_lea.hbm %s471_s1, 128 }
   0x5   :  { %p281_p0 = scmp.ne.s32.totalorder %s471_s1, %s280_s24  ;;  %p284_p1 = scmp.lt.u32.totalorder %s280_s24, %s471_s1 }
   0x7   :  { %p286_p2 = pnand %p284_p1, %p281_p0 }
   0x9   :  { %289 = shalt.err (!%p286_p2)
}
   0xa   :  { %s290_s29 = scalar_lea.vmem %s31_s19, 128  ;;  %p295_p4 = scmp.lt.s32.totalorder %s31_s19, %s31_s19 }
   0xb   :  { %p291_p3 = scmp.ne.s32.totalorder %s31_s19, %s290_s29  ;;  %p296_p5 = scmp.lt.s32.totalorder %s290_s29, %s290_s29 }
   0xd   :  { %p297_p6 = por %p296_p5, %p295_p4 }
   0xf   :  { %p298_p7 = pnand %p297_p6, %p291_p3 }
  0x11   :  { %301 = shalt.err (!%p298_p7)
}
  0x12   :  { %33 = dma.hbm_to_vmem [thread:$0]  %s471_s1, 128, %s31_s19, [#allocation7]  }
  0x13   :  { %s302_s9 = scalar_lea.hbm %s470_s0, 128 }
  0x14   :  { %p303_p8 = scmp.ne.s32.totalorder %s470_s0, %s302_s9  ;;  %p306_p9 = scmp.lt.u32.totalorder %s302_s9, %s470_s0 }
  0x16   :  { %p308_p10 = pnand %p306_p9, %p303_p8 }
  0x18   :  { %311 = shalt.err (!%p308_p10)
}
  0x19   :  { %s312_s14 = scalar_lea.vmem %s21_s21, 128  ;;  %p317_p12 = scmp.lt.s32.totalorder %s21_s21, %s21_s21 }
  0x1a   :  { %p313_p11 = scmp.ne.s32.totalorder %s21_s21, %s312_s14  ;;  %p318_p13 = scmp.lt.s32.totalorder %s312_s14, %s312_s14 }
  0x1c   :  { %p319_p0 = por %p318_p13, %p317_p12 }
  0x1e   :  { %p320_p1 = pnand %p319_p0, %p313_p11 }
  0x20   :  { %323 = shalt.err (!%p320_p1)
}
  0x21   :  { %23 = dma.hbm_to_vmem [thread:$0]  %s470_s0, 128, %s21_s21, [#allocation4]  }
  0x22   :  { %s376_s16 = smov [#allocation8]   ;;  %s324_s20 = scalar_lea.hbm %s473_s3, 2048 }
  0x23   :  { %s41_s17 = sshll.u32 %s376_s16, 4  ;;  %p325_p2 = scmp.ne.s32.totalorder %s473_s3, %s324_s20  ;;  %s42_s17 = int_to_ptr.vmem [resolvable:$true] %s41_s17 }
  0x24   :  { %p328_p3 = scmp.lt.u32.totalorder %s324_s20, %s473_s3 }
  0x26   :  { %p330_p4 = pnand %p328_p3, %p325_p2 }
  0x28   :  { %333 = shalt.err (!%p330_p4)
}
  0x29   :  { %s334_s26 = scalar_lea.vmem %s42_s17, 2048  ;;  %p339_p6 = scmp.lt.s32.totalorder %s42_s17, %s42_s17 }
  0x2a   :  { %p335_p5 = scmp.ne.s32.totalorder %s42_s17, %s334_s26  ;;  %p340_p7 = scmp.lt.s32.totalorder %s334_s26, %s334_s26 }
  0x2c   :  { %p341_p8 = por %p340_p7, %p339_p6 }
  0x2e   :  { %p342_p9 = pnand %p341_p8, %p335_p5 }
  0x30   :  { %345 = shalt.err (!%p342_p9)
}
  0x31   :  { %s377_s0 = smov 128   ;;  %s378_s21 = smov 8  }
  0x32   :  { %47 = dma.hbm_to_vmem [thread:$0]  %s473_s3, 2048, %s42_s17, [#allocation7], %s377_s0, %s377_s0, %s378_s21  }
  0x33   :  { %368 = dma.done.wait [#allocation4], 128  }
  0x34   :  { %369 = vsyncadd [#allocation4], 4294967168 }
  0x35   :  { %370 = dma.done.wait [#allocation7], 2176  }
  0x36   :  { %371 = vsyncadd [#allocation7], 4294965120  ;;  %v379_v0 = vmov 0.0|0.0   ;;  %vm380_vm0 = vmmov 0   ;;  %v381_v1 = vmov 0.0   ;;  %v74_v2 = vld [vmem:[#allocation8] sm:$0xff]  ;;  %v91_v33 = vstv %s474_s4 }
  0x37   :  { %243 = vmatprep.subr.bf16.mxu0 %v379_v0  ;;  %240 = vmatprep.mubr.msk.f32.mxu0 %vm380_vm0, %v381_v1  ;;  %v75_v3 = vld [vmem:[#allocation8 + $0x8] sm:$0xff]  ;;  %v76_v4 = vld [vmem:[#allocation8 + $0x10] sm:$0xff]  ;;  %v77_v6 = vld [vmem:[#allocation8 + $0x18] sm:$0xff] }
  0x38   :  { %v244_v5 = vpack.c.bf16 %v75_v3, %v74_v2  ;;  %v247_v7 = vpack.c.bf16 %v77_v6, %v76_v4  ;;  %v78_v8 = vld [vmem:[#allocation8 + $0x20] sm:$0xff]  ;;  %v79_v9 = vld [vmem:[#allocation8 + $0x28] sm:$0xff]  ;;  %v80_v11 = vld [vmem:[#allocation8 + $0x30] sm:$0xff] }
  0x39   :  { %v250_v10 = vpack.c.bf16 %v79_v9, %v78_v8  ;;  %v81_v12 = vld [vmem:[#allocation8 + $0x38] sm:$0xff]  ;;  %v82_v14 = vld [vmem:[#allocation8 + $0x40] sm:$0xff]  ;;  %v83_v15 = vld [vmem:[#allocation8 + $0x48] sm:$0xff] }
  0x3a   :  { %245 = vmatpush3.bf16.msra.mxu0 %v244_v5  ;;  %v253_v13 = vpack.c.bf16 %v81_v12, %v80_v11  ;;  %v256_v16 = vpack.c.bf16 %v83_v15, %v82_v14  ;;  %v84_v17 = vld [vmem:[#allocation8 + $0x50] sm:$0xff]  ;;  %v85_v18 = vld [vmem:[#allocation8 + $0x58] sm:$0xff]  ;;  %v86_v20 = vld [vmem:[#allocation8 + $0x60] sm:$0xff] }
  0x3b   :  { %246 = vmatprep.subr.bf16.mxu0 %v379_v0  ;;  %v259_v19 = vpack.c.bf16 %v85_v18, %v84_v17  ;;  %v87_v21 = vld [vmem:[#allocation8 + $0x68] sm:$0xff]  ;;  %v59_v22 = vld [vmem:[#allocation3] sm:$0xff]  ;;  %v60_v24 = vld [vmem:[#allocation6] sm:$0xff] }
  0x3c   :  { %v262_v23 = vpack.c.bf16 %v87_v21, %v86_v20  ;;  %v188_v25 = vld [vmem:[%s472_s2] ss:$0 sm:$0xff]  ;;  %v189_v26 = vld [vmem:[%s472_s2 + $0x1] ss:$0 sm:$0xff]  ;;  %v89_v28 = vld [vmem:[#allocation8 + $0x78] sm:$0xff]  ;;  %v168_v40 = vsub.f32 %v59_v22, %v60_v24  ;;  %s382_s2 = smov [#allocation9]  }
  0x3d   :  { %v88_v27 = vld [vmem:[#allocation8 + $0x70] sm:$0xff]  ;;  %v67_v29 = vmul.f32 %v188_v25, %v59_v22  ;;  %v72_v30 = vmul.f32 %v189_v26, %v60_v24  ;;  %s178_s9 = sshll.u32 %s382_s2, 4  ;;  %s179_s9 = int_to_ptr.vmem [resolvable:$true] %s178_s9 }
  0x3e   :  { %248 = vmatpush3.bf16.msra.mxu0 %v247_v7  ;;  %v265_v31 = vpack.c.bf16 %v89_v28, %v88_v27  ;;  %s346_s10 = scalar_lea.vmem %s179_s9, 128  ;;  %p351_p11 = scmp.lt.s32.totalorder %s179_s9, %s179_s9 }
  0x3f   :  { %249 = vmatprep.subr.bf16.mxu0 %v379_v0  ;;  %v73_v32 = vadd.f32 %v72_v30, %v67_v29  ;;  %p347_p10 = scmp.ne.s32.totalorder %s179_s9, %s346_s10  ;;  %p352_p12 = scmp.lt.s32.totalorder %s346_s10, %s346_s10 }
  0x41   :  { %p353_p13 = por %p352_p12, %p351_p11 }
  0x42   :  { %251 = vmatpush3.bf16.msra.mxu0 %v250_v10 }
  0x43   :  { %252 = vmatprep.subr.bf16.mxu0 %v379_v0  ;;  %p354_p0 = pnand %p353_p13, %p347_p10 }
  0x46   :  { %254 = vmatpush3.bf16.msra.mxu0 %v253_v13 }
  0x47   :  { %255 = vmatprep.subr.bf16.mxu0 %v379_v0 }
  0x4a   :  { %257 = vmatpush3.bf16.msra.mxu0 %v256_v16 }
  0x4b   :  { %258 = vmatprep.subr.bf16.mxu0 %v379_v0 }
  0x4e   :  { %260 = vmatpush3.bf16.msra.mxu0 %v259_v19 }
  0x4f   :  { %261 = vmatprep.subr.bf16.mxu0 %v379_v0 }
  0x52   :  { %263 = vmatpush3.bf16.msra.mxu0 %v262_v23 }
  0x53   :  { %264 = vmatprep.subr.bf16.mxu0 %v379_v0 }
  0x56   :  { %266 = vmatpush3.bf16.msra.mxu0 %v265_v31 }
  0x59   :  { %241 = vmatmul.mubr.f32.vlgmr.msra.gmra.mrb[0].mxu0 %v73_v32 }
 0x12c   :  { %v158_v34 = vpop.f32.mrb[0].mxu0 }
 0x12d   :  { %v159_v35 = vadd.f32 %v158_v34, %v91_v33  ;;  %v242_v36 = vpop.f32.mrb[1].mxu0 }
 0x12f   :  { %v190_v37 = vmul.f32 -1.442695, %v159_v35 }
 0x131   :  { %276 = vpow2.f32 %v190_v37 }
 0x13b   :  { %v277_v38 = vpop.eup %276 }
 0x13c   :  { %v165_v39 = vadd.f32 1.0, %v277_v38 }
 0x13e   :  { %278 = vrcp.f32 %v165_v39 }
 0x148   :  { %v279_v41 = vpop.eup %278 }
 0x149   :  { %v169_v42 = vmul.f32 %v279_v41, %v168_v40 }
 0x14b   :  { %v170_v43 = vadd.f32 %v169_v42, %v60_v24 }
 0x14d   :  { %171 = vst [vmem:[#allocation9] sm:$0xff] %v170_v43 }
 0x14e   :  { %357 = shalt.err (!%p354_p0)
}
 0x14f   :  { %s358_s12 = scalar_lea.hbm %s475_s5, 128 }
 0x150   :  { %p359_p1 = scmp.ne.s32.totalorder %s475_s5, %s358_s12  ;;  %p362_p2 = scmp.lt.u32.totalorder %s358_s12, %s475_s5 }
 0x152   :  { %p364_p3 = pnand %p362_p2, %p359_p1 }
 0x154   :  { %367 = shalt.err (!%p364_p3)
}
 0x155   :  { %181 = dma.vmem_to_hbm [thread:$0]  %s179_s9, 128, %s475_s5, [#allocation5]  }
 0x156   :  { %372 = dma.done.wait [#allocation5], 128  }
 0x157   :  { %373 = vsyncadd [#allocation5], 4294967168 }
 0x158   :  { %185 = vsyncpa [#allocation4], 1 }
 0x159   :  { %186 = vsyncpa [#allocation7], 1 }
 0x15a   :  { %187 = vsyncpa [#allocation5], 1 }

</bundles_post_ra>
